<compile_context>
chip_gen: v7x
topology: tpu7x:2x2x1
jax: 0.10.0
libtpu: 0.0.40
codegen_flags: <defaults>
</compile_context>

<pallas_src>
import functools

import jax
import jax.numpy as jnp
from jax.experimental import pallas as pl
from jax.experimental.pallas import tpu as pltpu


# --------------------------------------------------------------------------
# device-dependent tiling / compiler knobs
# --------------------------------------------------------------------------

def _mm_tile_targets():
    try:
        kind = jax.devices()[0].device_kind.lower()
    except Exception:
        kind = ""
    if "v5 lite" in kind or "v5e" in kind or "v5lite" in kind:
        return 128, 128, 512      # v5e: 4x128^2 MXU, single vst slot
    return 256, 256, 512          # v6e / v7x: 2x256^2 MXU


_TM, _TN, _TK = _mm_tile_targets()
_VMEM_LIMIT = 48 * 1024 * 1024    # explicit scoped-VMEM budget (fits v7x's 64 MiB)


def _round_up(x, m):
    return ((x + m - 1) // m) * m


def _cpad(c):
    return _round_up(c, 128)      # lane-dense channel padding, network-wide


def _pick_tile(total, target):
    """Largest multiple of 128 <= target dividing `total` (or `total` if small)."""
    if total <= target:
        return total
    t = max(128, (target // 128) * 128)
    while total % t:
        t -= 128
    return max(t, 128)


def _row_tile(ho, target=16):
    for rt in range(min(ho, target), 0, -1):
        if ho % rt == 0:
            return rt
    return 1


def _same_pad(size, k, s):
    """TF-style SAME padding (EfficientNet static same-padding convs)."""
    out = -(-size // s)
    total = max((out - 1) * s + k - size, 0)
    return total // 2, total - total // 2, out


# --------------------------------------------------------------------------
# fused tiled matmul kernel:  act((x (*gate) @ w) * bn_scale + bn_bias) (+ res)
# --------------------------------------------------------------------------

def _mm_kernel(*refs, act, has_scale, has_gate, has_res):
    it = iter(refs)
    x_ref = next(it)
    w_ref = next(it)
    s_ref = next(it) if has_scale else None
    bias_ref = next(it)
    g_ref = next(it) if has_gate else None
    r_ref = next(it) if has_res else None
    o_ref = next(it)
    acc_ref = next(it)

    kstep = pl.program_id(3)

    @pl.when(kstep == 0)
    def _init():
        acc_ref[...] = jnp.zeros_like(acc_ref)

    x = x_ref[0]                                  # (tm, tk) bf16
    if has_gate:
        x = x * g_ref[0]                          # SE channel gate fused on K side
    acc_ref[...] += jnp.dot(x, w_ref[...], preferred_element_type=jnp.float32)

    @pl.when(kstep == pl.num_programs(3) - 1)
    def _epilogue():
        acc = acc_ref[...]
        if has_scale:
            acc = acc * s_ref[...]                # folded BatchNorm scale
        acc = acc + bias_ref[...]                 # bias after matmul (K zero-pad exact)
        if act == "swish":
            acc = acc * jax.nn.sigmoid(acc)
        elif act == "sigmoid":
            acc = jax.nn.sigmoid(acc)
        if has_res:
            acc = acc + r_ref[0].astype(jnp.float32)   # fused residual add
        o_ref[0] = acc.astype(o_ref.dtype)


def matmul_fused(x, w, scale, bias, *, act="none", gate=None, residual=None,
                 out_dtype=jnp.bfloat16):
    """x:(B,M,K) bf16, w:(K,N) bf16, scale/bias:(1,N) f32, gate:(B,1,K) bf16,
    residual:(B,M,N) bf16.  Tiled MXU matmul with fused BN / activation / SE gate
    / residual; f32 VMEM accumulator."""
    B, M, K = x.shape
    N = w.shape[1]
    tk = _pick_tile(K, _TK)
    tn = _pick_tile(N, _TN)
    tm = min(_TM, _round_up(M, 8))
    Mp = _round_up(M, tm)
    if Mp != M:
        x = jnp.pad(x, ((0, 0), (0, Mp - M), (0, 0)))
        if residual is not None:
            residual = jnp.pad(residual, ((0, 0), (0, Mp - M), (0, 0)))

    has_scale = scale is not None
    has_gate = gate is not None
    has_res = residual is not None

    in_specs = [
        pl.BlockSpec((1, tm, tk), lambda b, i, j, k: (b, i, k)),
        pl.BlockSpec((tk, tn), lambda b, i, j, k: (k, j)),
    ]
    inputs = [x, w]
    if has_scale:
        in_specs.append(pl.BlockSpec((1, tn), lambda b, i, j, k: (0, j)))
        inputs.append(scale)
    in_specs.append(pl.BlockSpec((1, tn), lambda b, i, j, k: (0, j)))
    inputs.append(bias)
    if has_gate:
        in_specs.append(pl.BlockSpec((1, 1, tk), lambda b, i, j, k: (b, 0, k)))
        inputs.append(gate)
    if has_res:
        in_specs.append(pl.BlockSpec((1, tm, tn), lambda b, i, j, k: (b, i, j)))
        inputs.append(residual)

    n_sig = B * Mp * N if act in ("swish", "sigmoid") else 0
    cost = pl.CostEstimate(
        flops=2 * B * Mp * N * K + 4 * B * Mp * N,
        transcendentals=n_sig,
        bytes_accessed=2 * (B * Mp * K + K * N + B * Mp * N)
        + (2 * B * Mp * N if has_res else 0))

    out = pl.pallas_call(
        functools.partial(_mm_kernel, act=act, has_scale=has_scale,
                          has_gate=has_gate, has_res=has_res),
        grid=(B, Mp // tm, N // tn, K // tk),
        in_specs=in_specs,
        out_specs=pl.BlockSpec((1, tm, tn), lambda b, i, j, k: (b, i, j)),
        out_shape=jax.ShapeDtypeStruct((B, Mp, N), out_dtype),
        scratch_shapes=[pltpu.VMEM((tm, tn), jnp.float32)],
        compiler_params=pltpu.CompilerParams(
            dimension_semantics=("parallel", "parallel", "parallel", "arbitrary"),
            vmem_limit_bytes=_VMEM_LIMIT),
        cost_estimate=cost,
    )(*inputs)
    if Mp != M:
        out = out[:, :M, :]
    return out


# --------------------------------------------------------------------------
# depthwise kxk conv: row-tiled, in-kernel stride, manual double-buffered DMA,
# fused BN + swish + SE channel-sum pooling
# --------------------------------------------------------------------------

def _dw_kernel(x_hbm, w_ref, s_ref, b_ref, o_ref, sum_ref, xbuf, acc_ref, sem,
               *, k, stride, rt, bh, wo, n_rt):
    b = pl.program_id(0)
    r = pl.program_id(1)
    slot = r % 2

    def window(rr, sl):
        return pltpu.make_async_copy(
            x_hbm.at[b, pl.ds(rr * (rt * stride), bh)],   # row window incl. halo
            xbuf.at[sl],
            sem.at[sl])

    @pl.when(r == 0)
    def _first():
        window(0, 0).start()                 # first tile of this image: own DMA
        sum_ref[...] = jnp.zeros_like(sum_ref)

    window(r, slot).wait()                   # started here (r==0) or by step r-1

    @pl.when(r + 1 < n_rt)
    def _prefetch():
        window(r + 1, 1 - slot).start()      # hide next row tile behind compute

    # depthwise conv with the stride applied in-kernel (only ho x wo written)
    for i in range(k * k):
        dy, dx = i // k, i % k
        if stride == 1:
            patch = xbuf[slot, pl.ds(dy, rt), pl.ds(dx, wo), :]
        else:
            patch = xbuf[slot, pl.ds(dy, rt, stride), pl.ds(dx, wo, stride), :]
        contrib = patch.astype(jnp.float32) * w_ref[i:i + 1, :]
        if i == 0:
            acc_ref[...] = contrib
        else:
            acc_ref[...] += contrib

    a = acc_ref[...] * s_ref[...] + b_ref[...]        # folded BatchNorm
    act = a * jax.nn.sigmoid(a)                       # swish
    o_ref[0] = act.astype(o_ref.dtype)
    # fused squeeze-excite pooling: accumulate channel sums across row tiles
    sum_ref[...] += jnp.sum(act, axis=(0, 1), keepdims=True)[0]


def dwconv_bn_swish(x, w, scale, bias, k, stride):
    """Depthwise kxk conv (SAME) + BN + swish.  Returns (activation, channel sums,
    number of output pixels) so the SE pooling needs no extra pass."""
    n, h, wdt, cp = x.shape
    pt, pb, ho = _same_pad(h, k, stride)
    plf, prt, wo = _same_pad(wdt, k, stride)
    xp = jnp.pad(x, ((0, 0), (pt, pb), (plf, prt), (0, 0)))
    wp = wdt + plf + prt
    rt = _row_tile(ho)
    n_rt = ho // rt
    bh = (rt - 1) * stride + k               # input rows needed per row tile

    cost = pl.CostEstimate(
        flops=n * ho * wo * cp * (2 * k * k + 6),
        transcendentals=n * ho * wo * cp,
        bytes_accessed=2 * (xp.size + n * ho * wo * cp) + 4 * (k * k + 2) * cp)

    out, sums = pl.pallas_call(
        functools.partial(_dw_kernel, k=k, stride=stride, rt=rt, bh=bh,
                          wo=wo, n_rt=n_rt),
        grid=(n, n_rt),
        in_specs=[
            pl.BlockSpec(memory_space=pl.ANY),                 # input stays in HBM
            pl.BlockSpec((k * k, cp), lambda b, r: (0, 0)),    # depthwise taps
            pl.BlockSpec((1, cp), lambda b, r: (0, 0)),        # BN scale
            pl.BlockSpec((1, cp), lambda b, r: (0, 0)),        # BN bias
        ],
        out_specs=(
            pl.BlockSpec((1, rt, wo, cp), lambda b, r: (b, r, 0, 0)),
            pl.BlockSpec((1, cp), lambda b, r: (b, 0)),        # resident accumulator
        ),
        out_shape=(jax.ShapeDtypeStruct((n, ho, wo, cp), jnp.bfloat16),
                   jax.ShapeDtypeStruct((n, cp), jnp.float32)),
        scratch_shapes=[pltpu.VMEM((2, bh, wp, cp), jnp.bfloat16),
                        pltpu.VMEM((rt, wo, cp), jnp.float32),
                        pltpu.SemaphoreType.DMA((2,))],
        compiler_params=pltpu.CompilerParams(
            dimension_semantics=("parallel", "arbitrary"),
            vmem_limit_bytes=_VMEM_LIMIT),
        cost_estimate=cost,
    )(xp, w, scale, bias)
    return out, sums, ho * wo


# --------------------------------------------------------------------------
# final global average pool (head output is only 7x7x1280 at full resolution,
# so one whole-image block per batch element is already VMEM-friendly)
# --------------------------------------------------------------------------

def _gap_kernel(x_ref, o_ref, *, inv):
    x = x_ref[0].astype(jnp.float32)
    o_ref[...] = jnp.sum(x, axis=(0, 1), keepdims=True)[0] * inv


def global_avg_pool(x):
    n, h, w, c = x.shape
    return pl.pallas_call(
        functools.partial(_gap_kernel, inv=1.0 / float(h * w)),
        grid=(n,),
        in_specs=[pl.BlockSpec((1, h, w, c), lambda b: (b, 0, 0, 0))],
        out_specs=pl.BlockSpec((1, c), lambda b: (b, 0)),
        out_shape=jax.ShapeDtypeStruct((n, c), jnp.float32),
        compiler_params=pltpu.CompilerParams(
            dimension_semantics=("parallel",), vmem_limit_bytes=_VMEM_LIMIT),
    )(x)


# --------------------------------------------------------------------------
# layer wrappers
# --------------------------------------------------------------------------

def conv1x1_bn_act(x, w, scale, bias, act):
    n, hh, ww, cin = x.shape
    y = matmul_fused(x.reshape(1, n * hh * ww, cin), w, scale, bias, act=act)
    return y.reshape(n, hh, ww, w.shape[1])


def conv1x1_proj(x, gate, w, scale, bias, residual):
    """Projection 1x1 conv with SE gate (K side) and residual (epilogue) fused."""
    n, hh, ww, cin = x.shape
    cout = w.shape[1]
    hw = hh * ww
    res3 = residual.reshape(n, hw, cout) if residual is not None else None
    y = matmul_fused(x.reshape(n, hw, cin), w, scale, bias, act="none",
                     gate=gate.reshape(n, 1, cin), residual=res3)
    return y.reshape(n, hh, ww, cout)


def stem_conv(x, w, scale, bias):
    """3x3/stride-2 stem: im2col via strided slices + fused MXU matmul.
    K is padded only to 32 sublanes (not 128) so the MXU is not fed ~79% zeros."""
    n, h, wdt, cin = x.shape
    k, stride = 3, 2
    pt, pb, ho = _same_pad(h, k, stride)
    plf, prt, wo = _same_pad(wdt, k, stride)
    xp = jnp.pad(x, ((0, 0), (pt, pb), (plf, prt), (0, 0)))
    patches = []
    for dy in range(k):
        for dx in range(k):
            patches.append(jax.lax.slice(
                xp, (0, dy, dx, 0),
                (n, dy + (ho - 1) * stride + 1, dx + (wo - 1) * stride + 1, cin),
                (1, stride, stride, 1)))
    pat = jnp.stack(patches, axis=3).reshape(n * ho * wo, k * k * cin)
    pat = jnp.pad(pat, ((0, 0), (0, w.shape[0] - k * k * cin))).astype(jnp.bfloat16)
    # TODO(synk): a fully in-kernel im2col stem kernel would avoid materializing
    # the patch tensor in HBM entirely.
    out = matmul_fused(pat[None], w, scale, bias, act="swish")
    return out.reshape(n, ho, wo, w.shape[1])


def mbconv(x, p):
    identity = x
    h = x
    if p["expand"] is not None:
        ew, es, eb = p["expand"]
        h = conv1x1_bn_act(h, ew, es, eb, act="swish")
    dw_w, dw_s, dw_b = p["dw"]
    h, ch_sums, hw = dwconv_bn_swish(h, dw_w, dw_s, dw_b, p["k"], p["stride"])
    # squeeze-excite: pooling already fused into the depthwise kernel
    w1, b1, w2, b2 = p["se"]
    pooled = (ch_sums * (1.0 / hw)).astype(jnp.bfloat16)            # (N, Cexp_p)
    r1 = matmul_fused(pooled[None], w1, None, b1, act="swish")      # identity scale skipped
    gate = matmul_fused(r1, w2, None, b2, act="sigmoid")[0]         # (N, Cexp_p)
    pw, ps, pb_ = p["proj"]
    res = identity if p["has_res"] else None
    # TODO(synk): drop_connect is identity at inference time and is omitted.
    return conv1x1_proj(h, gate, pw, ps, pb_, res)


# --------------------------------------------------------------------------
# EfficientNet-B0 parameters (pre-padded / pre-reshaped once at init time)
# --------------------------------------------------------------------------

# (repeats, kernel, stride, expand_ratio, in_ch, out_ch, se_ratio); width/depth = 1.0
B0_BLOCKS = [
    (1, 3, 1, 1, 32, 16, 0.25),
    (2, 3, 2, 6, 16, 24, 0.25),
    (2, 5, 2, 6, 24, 40, 0.25),
    (3, 3, 2, 6, 40, 80, 0.25),
    (3, 5, 1, 6, 80, 112, 0.25),
    (4, 5, 2, 6, 112, 192, 0.25),
    (1, 3, 1, 6, 192, 320, 0.25),
]
STEM_CH = 32
HEAD_CH = 1280


def _padded_matrix(key, cin, cout, cin_p, cout_p):
    w = jax.random.normal(key, (cin, cout), jnp.float32) / (cin ** 0.5)
    return jnp.zeros((cin_p, cout_p), jnp.float32).at[:cin, :cout].set(w) \
        .astype(jnp.bfloat16)


def _padded_bn(key, c, c_p):
    k1, k2 = jax.random.split(key)
    s = 1.0 + 0.05 * jax.random.normal(k1, (c,), jnp.float32)
    b = 0.05 * jax.random.normal(k2, (c,), jnp.float32)
    return (jnp.zeros((1, c_p), jnp.float32).at[0, :c].set(s),
            jnp.zeros((1, c_p), jnp.float32).at[0, :c].set(b))


def _padded_bias(key, c, c_p):
    b = 0.01 * jax.random.normal(key, (c,), jnp.float32)
    return jnp.zeros((1, c_p), jnp.float32).at[0, :c].set(b)


def init_params(key):
    # TODO(synk): original module loads the efficientnet-b0 checkpoint via
    # torch.load; here weights are deterministic synthetic inits of the same
    # (pre-padded, pre-reshaped) shapes.
    keys = iter(jax.random.split(key, 512))
    stem_p = _cpad(STEM_CH)
    params = {"stem_w": _padded_matrix(next(keys), 27, STEM_CH,
                                       _round_up(27, 8), stem_p)}
    params["stem_s"], params["stem_b"] = _padded_bn(next(keys), STEM_CH, stem_p)
    blocks = []
    for (reps, k, s, e, ci, co, se) in B0_BLOCKS:
        for rep in range(reps):
            cin = ci if rep == 0 else co
            stride = s if rep == 0 else 1
            cexp = cin * e
            cse = max(1, int(cin * se))
            cin_p, cexp_p, cout_p = _cpad(cin), _cpad(cexp), _cpad(co)
            cse_p = _round_up(cse, 8)
            p = {"k": k, "stride": stride, "has_res": stride == 1 and cin == co}
            if e != 1:
                p["expand"] = (_padded_matrix(next(keys), cin, cexp, cin_p, cexp_p),
                               *_padded_bn(next(keys), cexp, cexp_p))
            else:
                p["expand"] = None
            dw = jax.random.normal(next(keys), (k * k, cexp), jnp.float32) / float(k)
            p["dw"] = (jnp.zeros((k * k, cexp_p), jnp.float32).at[:, :cexp].set(dw),
                       *_padded_bn(next(keys), cexp, cexp_p))
            p["se"] = (_padded_matrix(next(keys), cexp, cse, cexp_p, cse_p),
                       _padded_bias(next(keys), cse, cse_p),
                       _padded_matrix(next(keys), cse, cexp, cse_p, cexp_p),
                       _padded_bias(next(keys), cexp, cexp_p))
            p["proj"] = (_padded_matrix(next(keys), cexp, co, cexp_p, cout_p),
                         *_padded_bn(next(keys), co, cout_p))
            blocks.append(p)
    params["blocks"] = blocks
    params["head_w"] = _padded_matrix(next(keys), 320, HEAD_CH, _cpad(320), HEAD_CH)
    params["head_s"], params["head_b"] = _padded_bn(next(keys), HEAD_CH, HEAD_CH)
    return params


def effnet_forward(params, x_nchw):
    """EffNet.forward: extract_features -> adaptive_avg_pool2d(1) -> view(bs, -1)."""
    x = jnp.transpose(x_nchw, (0, 2, 3, 1)).astype(jnp.float32)   # NCHW -> NHWC
    h = stem_conv(x, params["stem_w"], params["stem_s"], params["stem_b"])
    for p in params["blocks"]:
        h = mbconv(h, p)
    h = conv1x1_bn_act(h, params["head_w"], params["head_s"], params["head_b"],
                       act="swish")
    return global_avg_pool(h)                                     # (bs, 1280) f32


if __name__ == "__main__":
    key = jax.random.PRNGKey(0)
    pkey, xkey = jax.random.split(key)
    params = init_params(pkey)
    x = jax.random.normal(xkey, (2, 3, 16, 16), jnp.float32)      # NCHW, like torch
    feat = jax.block_until_ready(effnet_forward(params, x))
    assert feat.shape == (2, HEAD_CH), feat.shape
    assert bool(jnp.all(jnp.isfinite(feat)))
    print("KERNEL_OK")
</pallas_src>

<mosaic_0001>
module attributes {stable_mosaic.version = 11 : i64} {
  func.func @_mm_kernel(%arg0: i32, %arg1: i32, %arg2: i32, %arg3: i32, %arg4: memref<1x128x32xbf16, #tpu.memory_space<vmem>>, %arg5: memref<32x128xbf16, #tpu.memory_space<vmem>>, %arg6: memref<1x128xf32, #tpu.memory_space<vmem>>, %arg7: memref<1x128xf32, #tpu.memory_space<vmem>>, %arg8: memref<1x128x128xbf16, #tpu.memory_space<vmem>>, %arg9: memref<128x128xf32, #tpu.memory_space<vmem>>) attributes {dimension_semantics = [#tpu.dimension_semantics<parallel>, #tpu.dimension_semantics<parallel>, #tpu.dimension_semantics<parallel>, #tpu.dimension_semantics<arbitrary>], iteration_bounds = array<i64: 1, 1, 1, 1>, scalar_prefetch = 0 : i64, scratch_operands = 1 : i64, tpu.core_type = #tpu.core_type<tc>, window_params = [{transform_indices = @transform_0, window_bounds = array<i64: 1, 128, 32>}, {transform_indices = @transform_1, window_bounds = array<i64: 32, 128>}, {transform_indices = @transform_2, window_bounds = array<i64: 1, 128>}, {transform_indices = @transform_3, window_bounds = array<i64: 1, 128>}, {transform_indices = @transform_4, window_bounds = array<i64: 1, 128, 128>}]} {
    %c0_i32 = arith.constant 0 : i32
    %0 = arith.cmpi eq, %arg3, %c0_i32 : i32
    %1 = arith.extui %0 : i1 to i32
    %c0_i32_0 = arith.constant 0 : i32
    %2 = arith.cmpi ne, %1, %c0_i32_0 : i32
    scf.if %2 {
      %cst_11 = arith.constant 0.000000e+00 : f32
      %13 = vector.broadcast %cst_11 : f32 to vector<128x128xf32>
      %c0_12 = arith.constant 0 : index
      %c0_13 = arith.constant 0 : index
      %14 = vector.load %arg9[%c0_12, %c0_13] : memref<128x128xf32, #tpu.memory_space<vmem>>, vector<128x128xf32>
      tpu.vector_store %arg9[%c0_12, %c0_13], %13 {strides = array<i32>} : memref<128x128xf32, #tpu.memory_space<vmem>>, vector<128x128xf32>,
    } else {
    }
    %c0 = arith.constant 0 : index
    %c0_1 = arith.constant 0 : index
    %c0_2 = arith.constant 0 : index
    %3 = vector.load %arg4[%c0, %c0_1, %c0_2] : memref<1x128x32xbf16, #tpu.memory_space<vmem>>, vector<1x128x32xbf16>
    %4 = vector.shape_cast %3 : vector<1x128x32xbf16> to vector<128x32xbf16>
    %c0_3 = arith.constant 0 : index
    %c0_4 = arith.constant 0 : index
    %5 = vector.load %arg9[%c0_3, %c0_4] : memref<128x128xf32, #tpu.memory_space<vmem>>, vector<128x128xf32>
    %c0_5 = arith.constant 0 : index
    %c0_6 = arith.constant 0 : index
    %6 = vector.load %arg5[%c0_5, %c0_6] : memref<32x128xbf16, #tpu.memory_space<vmem>>, vector<32x128xbf16>
    %cst = arith.constant dense<0.000000e+00> : vector<128x128xf32>
    %7 = tpu.matmul %4, %6, %cst {dimension_numbers = #tpu.dot_dimension_numbers<[1], [0], [0], [1], [0, 0, 1, 1], [], []>} : vector<128x32xbf16>, vector<32x128xbf16>, vector<128x128xf32> -> vector<128x128xf32>
    %8 = arith.addf %5, %7 : vector<128x128xf32>
    %c0_7 = arith.constant 0 : index
    %c0_8 = arith.constant 0 : index
    %9 = vector.load %arg9[%c0_7, %c0_8] : memref<128x128xf32, #tpu.memory_space<vmem>>, vector<128x128xf32>
    tpu.vector_store %arg9[%c0_7, %c0_8], %8 {strides = array<i32>} : memref<128x128xf32, #tpu.memory_space<vmem>>, vector<128x128xf32>,
    %c0_i32_9 = arith.constant 0 : i32
    %10 = arith.cmpi eq, %arg3, %c0_i32_9 : i32
    %11 = arith.extui %10 : i1 to i32
    %c0_i32_10 = arith.constant 0 : i32
    %12 = arith.cmpi ne, %11, %c0_i32_10 : i32
    scf.if %12 {
      %c0_11 = arith.constant 0 : index
      %c0_12 = arith.constant 0 : index
      %13 = vector.load %arg9[%c0_11, %c0_12] : memref<128x128xf32, #tpu.memory_space<vmem>>, vector<128x128xf32>
      %c0_13 = arith.constant 0 : index
      %c0_14 = arith.constant 0 : index
      %14 = vector.load %arg6[%c0_13, %c0_14] : memref<1x128xf32, #tpu.memory_space<vmem>>, vector<1x128xf32>
      %15 = vector.broadcast %14 : vector<1x128xf32> to vector<128x128xf32>
      %16 = arith.mulf %13, %15 : vector<128x128xf32>
      %c0_15 = arith.constant 0 : index
      %c0_16 = arith.constant 0 : index
      %17 = vector.load %arg7[%c0_15, %c0_16] : memref<1x128xf32, #tpu.memory_space<vmem>>, vector<1x128xf32>
      %18 = vector.broadcast %17 : vector<1x128xf32> to vector<128x128xf32>
      %19 = arith.addf %16, %18 : vector<128x128xf32>
      %20 = arith.negf %19 : vector<128x128xf32>
      %21 = math.exp %20 : vector<128x128xf32>
      %cst_17 = arith.constant 1.000000e+00 : f32
      %22 = vector.broadcast %cst_17 : f32 to vector<128x128xf32>
      %23 = arith.addf %22, %21 : vector<128x128xf32>
      %24 = arith.divf %22, %23 : vector<128x128xf32>
      %25 = arith.mulf %19, %24 : vector<128x128xf32>
      %26 = arith.truncf %25 : vector<128x128xf32> to vector<128x128xbf16>
      %c0_18 = arith.constant 0 : index
      %c0_19 = arith.constant 0 : index
      %c0_20 = arith.constant 0 : index
      %27 = vector.load %arg8[%c0_18, %c0_19, %c0_20] : memref<1x128x128xbf16, #tpu.memory_space<vmem>>, vector<1x128x128xbf16>
      %28 = vector.shape_cast %27 : vector<1x128x128xbf16> to vector<128x128xbf16>
      %29 = vector.shape_cast %26 : vector<128x128xbf16> to vector<1x128x128xbf16>
      tpu.vector_store %arg8[%c0_18, %c0_19, %c0_20], %29 {strides = array<i32>} : memref<1x128x128xbf16, #tpu.memory_space<vmem>>, vector<1x128x128xbf16>,
    } else {
    }
    return
  }
  func.func @transform_0(%arg0: i32, %arg1: i32, %arg2: i32, %arg3: i32) -> (i32, i32, i32) {
    %c0_i32 = arith.constant 0 : i32
    return %arg0, %arg1, %arg3 : i32, i32, i32
  }
  func.func @transform_1(%arg0: i32, %arg1: i32, %arg2: i32, %arg3: i32) -> (i32, i32) {
    %c0_i32 = arith.constant 0 : i32
    return %arg3, %arg2 : i32, i32
  }
  func.func @transform_2(%arg0: i32, %arg1: i32, %arg2: i32, %arg3: i32) -> (i32, i32) {
    %c0_i32 = arith.constant 0 : i32
    %c0_i32_0 = arith.constant 0 : i32
    return %c0_i32, %arg2 : i32, i32
  }
  func.func @transform_3(%arg0: i32, %arg1: i32, %arg2: i32, %arg3: i32) -> (i32, i32) {
    %c0_i32 = arith.constant 0 : i32
    %c0_i32_0 = arith.constant 0 : i32
    return %c0_i32, %arg2 : i32, i32
  }
  func.func @transform_4(%arg0: i32, %arg1: i32, %arg2: i32, %arg3: i32) -> (i32, i32, i32) {
    %c0_i32 = arith.constant 0 : i32
    return %arg0, %arg1, %arg2 : i32, i32, i32
  }
}

</mosaic_0001>

<bundles_post_ra>
// kernel: tpu_custom_call.1
= control target key start
LH: loop header
LB: loop body
LE: loop exit
PB: predicated region body
PF: predicated region fallthrough
CT: control target
= control target key end

     0   :  { %vm127_vm0 = vcmask 261120   ;;  %s988_s0 = inlined_call_operand.vmem [shape: bf16[1,128,32], index: 0, kind: input, shape index: {}]   ;;  %s989_s1 = inlined_call_operand.vmem [shape: bf16[32,128], index: 1, kind: input, shape index: {}]   ;;  %s990_s2 = inlined_call_operand.vmem [shape: f32[1,128], index: 2, kind: input, shape index: {}]   ;;  %s991_s3 = inlined_call_operand.vmem [shape: f32[1,128], index: 3, kind: input, shape index: {}]   ;;  %s992_s4 = inlined_call_operand.hbm [shape: bf16[1,128,128], index: 4, kind: output, shape index: {}]  }
   0x1   :  { %v706_v0 = vld [vmem:[%s989_s1] sm:$0xff]   ;;  %v707_v1 = vld [vmem:[%s989_s1 + $0x8] sm:$0xff]   ;;  %v712_v6 = vld [vmem:[%s988_s0 + $0x10] sm:$0xff]  }
   0x2   :  { %679 = vmatprep.subr.bf16.mxu0 %v706_v0  ;;  %699 = vmatprep.subr.bf16.mxu1 %v706_v0  ;;  %v708_v2 = vld [vmem:[%s988_s0] sm:$0xff]   ;;  %v710_v4 = vld [vmem:[%s988_s0 + $0x8] sm:$0xff]   ;;  %v713_v7 = vld [vmem:[%s988_s0 + $0x30] sm:$0xff]  }
   0x3   :  { %680 = vmatpush3.bf16.msra.mxu0 %v706_v0  ;;  %701 = vmatpush3.bf16.msra.mxu1 %v706_v0  ;;  %v709_v3 = vld [vmem:[%s988_s0 + $0x20] sm:$0xff]   ;;  %v711_v5 = vld [vmem:[%s988_s0 + $0x28] sm:$0xff]  }
   0x4   :  { %681 = vmatprep.subr.bf16.mxu0 %v707_v1  ;;  %700 = vmatprep.subr.bf16.mxu1 %v707_v1 }
   0x5   :  { %683 = vmatprep.mubr.msk.bf16.mxu0 %vm127_vm0, %v708_v2  ;;  %691 = vmatprep.mubr.msk.bf16.mxu1 %vm127_vm0, %v709_v3 }
   0x7   :  { %682 = vmatpush3.bf16.msra.mxu0 %v707_v1  ;;  %702 = vmatpush3.bf16.msra.mxu1 %v707_v1 }
   0xa   :  { %684 = vmatmul.mubr.msk.bf16.vlgmr.msra.gmra.mrb[0].mxu0 %vm127_vm0, %v710_v4  ;;  %692 = vmatmul.mubr.msk.bf16.vlgmr.msra.gmra.mrb[0].mxu1 %vm127_vm0, %v711_v5 }
   0xb   :  { %9 = vsyncpa [#allocation4], 0  ;;  %687 = vmatprep.mubr.msk.bf16.mxu0 %vm127_vm0, %v712_v6  ;;  %695 = vmatprep.mubr.msk.bf16.mxu1 %vm127_vm0, %v713_v7  ;;  %v714_v8 = vld [vmem:[%s988_s0 + $0x18] sm:$0xff]   ;;  %v873_v10 = vld [vmem:[%s990_s2] ss:$0 sm:$0xff] }
   0xc   :  { %v715_v9 = vld [vmem:[%s988_s0 + $0x38] sm:$0xff]   ;;  %v878_v12 = vld [vmem:[%s991_s3] ss:$0 sm:$0xff]  ;;  %s804_s0 = smov [#allocation3]  }
   0xd   :  { %s543_s2 = sshll.u32 %s804_s0, 4  ;;  %s544_s2 = int_to_ptr.vmem [resolvable:$true] %s543_s2 }
   0xe   :  { %s780_s3 = scalar_lea.vmem %s544_s2, 1024  ;;  %p785_p1 = scmp.lt.s32.totalorder %s544_s2, %s544_s2 }
   0xf   :  { %p781_p0 = scmp.ne.s32.totalorder %s544_s2, %s780_s3  ;;  %p786_p2 = scmp.lt.s32.totalorder %s780_s3, %s780_s3 }
  0x11   :  { %p787_p3 = por %p786_p2, %p785_p1 }
  0x12   :  { %688 = vmatmul.mubr.msk.bf16.gmra.mrb[4].mxu0 %vm127_vm0, %v714_v8  ;;  %696 = vmatmul.mubr.msk.bf16.gmra.mrb[4].mxu1 %vm127_vm0, %v715_v9 }
  0x13   :  { %p788_p4 = pnand %p787_p3, %p781_p0 }
  0xdd   :  { %v685_v11 = vpop.f32.mrb[0].mxu0  ;;  %v693_v13 = vpop.f32.mrb[0].mxu1 }
  0xde   :  { %v309_v14 = vmul.f32 %v685_v11, %v873_v10  ;;  %v317_v15 = vmul.f32 %v693_v13, %v873_v10  ;;  %v186_v16 = vpop.f32.mrb[1].mxu0  ;;  %v218_v17 = vpop.f32.mrb[1].mxu1 }
  0xdf   :  { %v307_v18 = vmul.f32 %v873_v10, %v186_v16  ;;  %v315_v19 = vmul.f32 %v873_v10, %v218_v17  ;;  %v686_v20 = vpop.f32.mrb[2].mxu0  ;;  %v694_v21 = vpop.f32.mrb[2].mxu1 }
  0xe0   :  { %v885_v22 = vadd.f32 %v878_v12, %v309_v14  ;;  %v888_v23 = vadd.f32 %v878_v12, %v317_v15  ;;  %v310_v24 = vmul.f32 %v686_v20, %v873_v10  ;;  %v318_v25 = vmul.f32 %v694_v21, %v873_v10  ;;  %v189_v26 = vpop.f32.mrb[3].mxu0  ;;  %v221_v27 = vpop.f32.mrb[3].mxu1 }
  0xe1   :  { %v893_v28 = vadd.f32 %v878_v12, %v307_v18  ;;  %v896_v29 = vadd.f32 %v878_v12, %v315_v19  ;;  %v308_v30 = vmul.f32 %v873_v10, %v189_v26  ;;  %v316_v31 = vmul.f32 %v873_v10, %v221_v27 }
  0xe2   :  { %v576_v32 = vmul.f32 -1.442695, %v885_v22  ;;  %v584_v33 = vmul.f32 -1.442695, %v888_v23  ;;  %v903_v34 = vadd.f32 %v878_v12, %v310_v24  ;;  %v906_v35 = vadd.f32 %v878_v12, %v318_v25 }
  0xe3   :  { %v574_v36 = vmul.f32 -1.442695, %v893_v28  ;;  %v582_v37 = vmul.f32 -1.442695, %v896_v29  ;;  %v911_v38 = vadd.f32 %v878_v12, %v308_v30  ;;  %v914_v39 = vadd.f32 %v878_v12, %v316_v31 }
  0xe4   :  { %716 = vpow2.f32 %v576_v32  ;;  %v577_v40 = vmul.f32 -1.442695, %v903_v34  ;;  %v585_v41 = vmul.f32 -1.442695, %v906_v35 }
  0xe5   :  { %718 = vpow2.f32 %v584_v33  ;;  %v689_v42 = vpop.f32.mrb[4].mxu0  ;;  %v697_v43 = vpop.f32.mrb[4].mxu1  ;;  %v575_v44 = vmul.f32 -1.442695, %v911_v38  ;;  %v583_v49 = vmul.f32 -1.442695, %v914_v39 }
  0xe6   :  { %720 = vpow2.f32 %v574_v36  ;;  %v313_v45 = vmul.f32 %v689_v42, %v873_v10  ;;  %v321_v46 = vmul.f32 %v697_v43, %v873_v10  ;;  %v202_v47 = vpop.f32.mrb[5].mxu0  ;;  %v234_v48 = vpop.f32.mrb[5].mxu1 }
  0xe7   :  { %722 = vpow2.f32 %v582_v37  ;;  %v311_v50 = vmul.f32 %v873_v10, %v202_v47  ;;  %v690_v51 = vpop.f32.mrb[6].mxu0  ;;  %v698_v52 = vpop.f32.mrb[6].mxu1  ;;  %v319_v0 = vmul.f32 %v873_v10, %v234_v48 }
  0xe8   :  { %724 = vpow2.f32 %v577_v40  ;;  %v924_v53 = vadd.f32 %v878_v12, %v313_v45  ;;  %v927_v54 = vadd.f32 %v878_v12, %v321_v46  ;;  %v314_v55 = vmul.f32 %v690_v51, %v873_v10  ;;  %v205_v56 = vpop.f32.mrb[7].mxu0  ;;  %v237_v57 = vpop.f32.mrb[7].mxu1 }
  0xe9   :  { %726 = vpow2.f32 %v585_v41  ;;  %v931_v58 = vadd.f32 %v878_v12, %v311_v50  ;;  %v942_v8 = vadd.f32 %v878_v12, %v319_v0  ;;  %v322_v13 = vmul.f32 %v698_v52, %v873_v10 }
  0xea   :  { %728 = vpow2.f32 %v575_v44  ;;  %v580_v59 = vmul.f32 -1.442695, %v924_v53  ;;  %v588_v60 = vmul.f32 -1.442695, %v927_v54  ;;  %v936_v61 = vadd.f32 %v878_v12, %v314_v55 }
  0xeb   :  { %730 = vpow2.f32 %v583_v49  ;;  %v578_v62 = vmul.f32 -1.442695, %v931_v58  ;;  %v312_v16 = vmul.f32 %v873_v10, %v205_v56  ;;  %v320_v19 = vmul.f32 %v873_v10, %v237_v57 }
  0xec   :  { %732 = vpow2.f32 %v580_v59  ;;  %v581_v63 = vmul.f32 -1.442695, %v936_v61  ;;  %v586_v24 = vmul.f32 -1.442695, %v942_v8  ;;  %v949_v27 = vadd.f32 %v878_v12, %v322_v13 }
  0xed   :  { %734 = vpow2.f32 %v588_v60  ;;  %v952_v31 = vadd.f32 %v878_v12, %v312_v16  ;;  %v955_v10 = vadd.f32 %v878_v12, %v320_v19 }
  0xee   :  { %v717_v1 = vpop.eup %716  ;;  %736 = vpow2.f32 %v578_v62  ;;  %v589_v37 = vmul.f32 -1.442695, %v949_v27 }
  0xef   :  { %v719_v2 = vpop.eup %718  ;;  %v396_v3 = vadd.f32 1.0, %v717_v1  ;;  %738 = vpow2.f32 %v581_v63  ;;  %v579_v42 = vmul.f32 -1.442695, %v952_v31  ;;  %v587_v44 = vmul.f32 -1.442695, %v955_v10 }
  0xf0   :  { %v721_v4 = vpop.eup %720  ;;  %v404_v5 = vadd.f32 1.0, %v719_v2 }
  0xf1   :  { %v723_v6 = vpop.eup %722  ;;  %740 = vrcp.f32 %v396_v3  ;;  %v394_v7 = vadd.f32 1.0, %v721_v4 }
  0xf2   :  { %v725_v9 = vpop.eup %724  ;;  %742 = vrcp.f32 %v404_v5  ;;  %v402_v11 = vadd.f32 1.0, %v723_v6 }
  0xf3   :  { %v727_v14 = vpop.eup %726  ;;  %744 = vrcp.f32 %v394_v7  ;;  %v397_v15 = vadd.f32 1.0, %v725_v9 }
  0xf4   :  { %v729_v17 = vpop.eup %728  ;;  %746 = vrcp.f32 %v402_v11  ;;  %v405_v18 = vadd.f32 1.0, %v727_v14 }
  0xf5   :  { %v731_v20 = vpop.eup %730  ;;  %748 = vrcp.f32 %v397_v15  ;;  %v395_v21 = vadd.f32 1.0, %v729_v17 }
  0xf6   :  { %v733_v25 = vpop.eup %732  ;;  %750 = vrcp.f32 %v405_v18  ;;  %v403_v26 = vadd.f32 1.0, %v731_v20 }
  0xf7   :  { %752 = vrcp.f32 %v395_v21  ;;  %v400_v30 = vadd.f32 1.0, %v733_v25  ;;  %v735_v32 = vpop.eup %734 }
  0xf8   :  { %754 = vrcp.f32 %v403_v26  ;;  %v737_v33 = vpop.eup %736  ;;  %v408_v0 = vadd.f32 1.0, %v735_v32 }
  0xf9   :  { %756 = vpow2.f32 %v586_v24  ;;  %v739_v36 = vpop.eup %738  ;;  %v398_v2 = vadd.f32 1.0, %v737_v33 }
  0xfa   :  { %758 = vrcp.f32 %v400_v30  ;;  %v401_v41 = vadd.f32 1.0, %v739_v36 }
  0xfb   :  { %v741_v40 = vpop.eup %740 }
  0xfc   :  { %v743_v43 = vpop.eup %742  ;;  %760 = vrcp.f32 %v401_v41  ;;  %v444_v48 = vmul.f32 %v741_v40, %v885_v22 }
  0xfd   :  { %v745_v45 = vpop.eup %744  ;;  %762 = vpow2.f32 %v589_v37  ;;  %v452_v51 = vmul.f32 %v743_v43, %v888_v23 }
  0xfe   :  { %v747_v46 = vpop.eup %746  ;;  %764 = vpow2.f32 %v579_v42  ;;  %v442_v56 = vmul.f32 %v745_v45, %v893_v28 }
  0xff   :  { %v749_v47 = vpop.eup %748  ;;  %766 = vpow2.f32 %v587_v44  ;;  %v450_v62 = vmul.f32 %v747_v46, %v896_v29 }
 0x100   :  { %v751_v12 = vpop.eup %750  ;;  %v445_v49 = vmul.f32 %v749_v47, %v903_v34  ;;  %768 = vrcp.f32 %v408_v0 }
 0x101   :  { %v753_v50 = vpop.eup %752  ;;  %v453_v52 = vmul.f32 %v751_v12, %v906_v35  ;;  %770 = vrcp.f32 %v398_v2 }
 0x102   :  { %v755_v55 = vpop.eup %754  ;;  %v630_v57 = vpack.c.bf16 %v445_v49, %v444_v48  ;;  %v443_v59 = vmul.f32 %v753_v50, %v911_v38 }
 0x103   :  { %v757_v60 = vpop.eup %756  ;;  %v650_v63 = vpack.c.bf16 %v453_v52, %v452_v51  ;;  %v451_v22 = vmul.f32 %v755_v55, %v914_v39 }
 0x104   :  { %662 = vst [vmem:[#allocation3 + $0x8] sm:$0xff] %v630_v57   ;;  %v625_v34 = vpack.c.bf16 %v443_v59, %v442_v56  ;;  %v759_v1 = vpop.eup %758  ;;  %v406_v35 = vadd.f32 1.0, %v757_v60 }
 0x105   :  { %666 = vst [vmem:[#allocation3 + $0x28] sm:$0xff] %v650_v63   ;;  %v645_v23 = vpack.c.bf16 %v451_v22, %v450_v62  ;;  %v448_v38 = vmul.f32 %v759_v1, %v924_v53 }
 0x106   :  { %626 = vst [vmem:[#allocation3] sm:$0xff] %v625_v34   ;;  %v761_v3 = vpop.eup %760  ;;  %772 = vrcp.f32 %v406_v35 }
 0x107   :  { %665 = vst [vmem:[#allocation3 + $0x20] sm:$0xff] %v645_v23   ;;  %v763_v28 = vpop.eup %762  ;;  %v449_v29 = vmul.f32 %v761_v3, %v936_v61 }
 0x108   :  { %v765_v4 = vpop.eup %764  ;;  %v409_v39 = vadd.f32 1.0, %v763_v28 }
 0x109   :  { %v767_v5 = vpop.eup %766  ;;  %v640_v6 = vpack.c.bf16 %v449_v29, %v448_v38  ;;  %v399_v7 = vadd.f32 1.0, %v765_v4 }
 0x10a   :  { %774 = vrcp.f32 %v409_v39  ;;  %v407_v9 = vadd.f32 1.0, %v767_v5  ;;  %v769_v11 = vpop.eup %768 }
 0x10b   :  { %664 = vst [vmem:[#allocation3 + $0x18] sm:$0xff] %v640_v6   ;;  %776 = vrcp.f32 %v399_v7  ;;  %v771_v13 = vpop.eup %770  ;;  %v456_v16 = vmul.f32 %v769_v11, %v927_v54 }
 0x10c   :  { %778 = vrcp.f32 %v407_v9  ;;  %v446_v18 = vmul.f32 %v771_v13, %v931_v58 }
 0x110   :  { %v773_v14 = vpop.eup %772 }
 0x111   :  { %v454_v20 = vmul.f32 %v773_v14, %v942_v8 }
 0x114   :  { %v775_v15 = vpop.eup %774 }
 0x115   :  { %v777_v53 = vpop.eup %776  ;;  %v457_v61 = vmul.f32 %v775_v15, %v949_v27 }
 0x116   :  { %v779_v17 = vpop.eup %778  ;;  %v447_v19 = vmul.f32 %v777_v53, %v952_v31 }
 0x117   :  { %v660_v21 = vpack.c.bf16 %v457_v61, %v456_v16  ;;  %v455_v24 = vmul.f32 %v779_v17, %v955_v10 }
 0x118   :  { %v635_v25 = vpack.c.bf16 %v447_v19, %v446_v18 }
 0x119   :  { %668 = vst [vmem:[#allocation3 + $0x38] sm:$0xff] %v660_v21   ;;  %v655_v26 = vpack.c.bf16 %v455_v24, %v454_v20 }
 0x11a   :  { %663 = vst [vmem:[#allocation3 + $0x10] sm:$0xff] %v635_v25  }
 0x11b   :  { %667 = vst [vmem:[#allocation3 + $0x30] sm:$0xff] %v655_v26  }
 0x11c   :  { %791 = shalt.err (!%p788_p4)
}
 0x11d   :  { %s792_s14 = scalar_lea.hbm %s992_s4, 1024 }
 0x11e   :  { %p793_p5 = scmp.ne.s32.totalorder %s992_s4, %s792_s14  ;;  %p796_p6 = scmp.lt.u32.totalorder %s792_s14, %s992_s4 }
 0x120   :  { %p798_p7 = pnand %p796_p6, %p793_p5 }
 0x122   :  { %801 = shalt.err (!%p798_p7)
}
 0x123   :  { %s805_s19 = smov 64   ;;  %s806_s20 = smov 4  }
 0x124   :  { %549 = dma.vmem_to_hbm [thread:$0]  %s544_s2, 1024, %s992_s4, [#allocation4], %s805_s19, %s805_s19, %s806_s20  }
 0x125   :  { %802 = dma.done.wait [#allocation4], 1024  }
 0x126   :  { %803 = vsyncadd [#allocation4], 4294966272 }
 0x127   :  { %553 = vsyncpa [#allocation4], 1 }

</bundles_post_ra>
